<compile_context>
chip_gen: v7x
topology: tpu7x:2x2x1
jax: 0.10.0
libtpu: 0.0.40
codegen_flags: <defaults>
</compile_context>

<pallas_src>
import functools

import jax
import jax.numpy as jnp
from jax.experimental import pallas as pl
from jax.experimental.pallas import tpu as pltpu


# ----------------------------- kernels --------------------------------------
def _dwt_hc_kernel_reduce(x1_ref, x2_ref, x3_ref, x4_ref, ll_ref, hs_ref, *,
                          norm, mean):
    # Blocks: (1, C, tile_h, Wh); x*_ref hold the RAW 2x2 polyphase samples
    # (even/even, odd/even, even/odd, odd/odd), no /2 applied yet.
    f32 = jnp.float32
    r1 = x1_ref[0].astype(f32)
    r2 = x2_ref[0].astype(f32)
    r3 = x3_ref[0].astype(f32)
    r4 = x4_ref[0].astype(f32)

    s = r1 + r2 + r3 + r4          # = 2 * LL
    t = 4.0 * r4 - s               # = 2 * (HL + LH + HH)

    # Folded constants: dwt_init's /2, the norm *0.5 + 0.5 (x3 subbands) and
    # the optional /3 for 'mean'.
    scale = 0.25 if norm else 0.5
    bias = 1.5 if norm else 0.0
    if mean:
        scale, bias = scale / 3.0, bias / 3.0

    hs = t * scale + bias if bias != 0.0 else t * scale

    ll_ref[0] = (0.5 * s).astype(ll_ref.dtype)
    hs_ref[0] = hs.astype(hs_ref.dtype)


def _dwt_hc_kernel_cat(x1_ref, x2_ref, x3_ref, x4_ref, ll_ref, hc_ref, *,
                       norm, C):
    # x*_ref blocks: (1, C, tile_h, Wh); hc_ref block: (1, 3C, tile_h, Wh)
    # written directly in torch.cat((HL, LH, HH), dim=1) order.
    f32 = jnp.float32
    r1 = x1_ref[0].astype(f32)
    r2 = x2_ref[0].astype(f32)
    r3 = x3_ref[0].astype(f32)
    r4 = x4_ref[0].astype(f32)

    ll = 0.5 * (r1 + r2 + r3 + r4)
    if norm:
        hl = 0.25 * (r3 + r4 - r1 - r2) + 0.5
        lh = 0.25 * (r2 + r4 - r1 - r3) + 0.5
        hh = 0.25 * (r1 + r4 - r2 - r3) + 0.5
    else:
        hl = 0.5 * (r3 + r4 - r1 - r2)
        lh = 0.5 * (r2 + r4 - r1 - r3)
        hh = 0.5 * (r1 + r4 - r2 - r3)

    ll_ref[0] = ll.astype(ll_ref.dtype)
    hc_ref[0, 0:C, :, :] = hl.astype(hc_ref.dtype)
    hc_ref[0, C:2 * C, :, :] = lh.astype(hc_ref.dtype)
    hc_ref[0, 2 * C:3 * C, :, :] = hh.astype(hc_ref.dtype)


# ----------------------------- wrapper --------------------------------------
def _pick_tile_h(Hh, C, Wh, itemsize, n_planes, budget_bytes=16 << 20):
    """Largest multiple-of-8 H tile whose double-buffered working set fits a
    conservative VMEM budget (safe for v7x's 32 MiB default scoped limit)."""
    per_row = 2 * n_planes * C * Wh * itemsize  # x2: double-buffered pipeline
    th = int(budget_bytes // max(per_row, 1))
    if th >= Hh:
        return Hh
    return max(8, (th // 8) * 8)


def dwt_hc(x, cs="sum", norm=True, *, tile_h=None, vmem_limit_bytes=None):
    """JAX/Pallas equivalent of DWT_Hc(cs, norm).forward(x) for NCHW input."""
    N, C, H, W = x.shape
    assert H % 2 == 0 and W % 2 == 0
    Hh, Wh = H // 2, W // 2

    if cs in ("sum", "mean"):
        # The torch code slices Hc channels [0:3],[3:6],[6:9]; this equals
        # HL+LH+HH exactly when C == 3 (the intended RGB use-case).
        assert C == 3, "cs='sum'/'mean' semantics require C == 3"

    # Polyphase views (strided slices). With allow_input_fusion these become
    # part of the Pallas input DMA pattern instead of an HBM round trip.
    x1 = x[:, :, 0::2, 0::2]   # even rows, even cols
    x2 = x[:, :, 1::2, 0::2]   # odd  rows, even cols
    x3 = x[:, :, 0::2, 1::2]   # even rows, odd  cols
    x4 = x[:, :, 1::2, 1::2]   # odd  rows, odd  cols

    itemsize = jnp.dtype(x.dtype).itemsize
    n_planes = 6 if cs in ("sum", "mean") else 8   # in-planes + out-planes (C-sized)
    th = tile_h if tile_h is not None else _pick_tile_h(Hh, C, Wh, itemsize, n_planes)
    grid = (N, pl.cdiv(Hh, th))

    in_spec = pl.BlockSpec((1, C, th, Wh), lambda n, h: (n, 0, h, 0))
    out_spec = pl.BlockSpec((1, C, th, Wh), lambda n, h: (n, 0, h, 0))
    out_nc = jax.ShapeDtypeStruct((N, C, Hh, Wh), x.dtype)

    cparams = pltpu.CompilerParams(
        dimension_semantics=("parallel", "parallel"),
        allow_input_fusion=[True, True, True, True],
        vmem_limit_bytes=vmem_limit_bytes,
    )

    in_bytes = 4 * N * C * Hh * Wh * itemsize
    if cs in ("sum", "mean"):
        out_bytes = 2 * N * C * Hh * Wh * itemsize
        cost = pl.CostEstimate(flops=8 * N * C * Hh * Wh, transcendentals=0,
                               bytes_accessed=in_bytes + out_bytes)
        kernel = functools.partial(_dwt_hc_kernel_reduce, norm=norm,
                                   mean=(cs == "mean"))
        ll, hs = pl.pallas_call(
            kernel,
            out_shape=(out_nc, out_nc),
            grid=grid,
            in_specs=[in_spec, in_spec, in_spec, in_spec],
            out_specs=(out_spec, out_spec),
            compiler_params=cparams,
            cost_estimate=cost,
        )(x1, x2, x3, x4)
        return ll, hs
    elif cs == "cat":
        out_bytes = 4 * N * C * Hh * Wh * itemsize
        cost = pl.CostEstimate(flops=12 * N * C * Hh * Wh, transcendentals=0,
                               bytes_accessed=in_bytes + out_bytes)
        kernel = functools.partial(_dwt_hc_kernel_cat, norm=norm, C=C)
        hc_spec = pl.BlockSpec((1, 3 * C, th, Wh), lambda n, h: (n, 0, h, 0))
        ll, hc = pl.pallas_call(
            kernel,
            out_shape=(out_nc, jax.ShapeDtypeStruct((N, 3 * C, Hh, Wh), x.dtype)),
            grid=grid,
            in_specs=[in_spec, in_spec, in_spec, in_spec],
            out_specs=(out_spec, hc_spec),
            compiler_params=cparams,
            cost_estimate=cost,
        )(x1, x2, x3, x4)
        return ll, hc
    else:
        raise ValueError(f"unknown cs={cs!r}")


# ----------------------- pure-JAX reference (mirrors torch) -----------------
def _ref_dwt_init(x):
    x01 = x[:, :, 0::2, :] / 2
    x02 = x[:, :, 1::2, :] / 2
    x1 = x01[:, :, :, 0::2]
    x2 = x02[:, :, :, 0::2]
    x3 = x01[:, :, :, 1::2]
    x4 = x02[:, :, :, 1::2]
    x_LL = x1 + x2 + x3 + x4
    x_HL = -x1 - x2 + x3 + x4
    x_LH = -x1 + x2 - x3 + x4
    x_HH = x1 - x2 - x3 + x4
    return x_LL, jnp.concatenate((x_HL, x_LH, x_HH), axis=1)


def _ref_dwt_hc(x, cs="sum", norm=True):
    LL, Hc = _ref_dwt_init(x)
    if norm:
        Hc = Hc * 0.5 + 0.5
    if cs == "sum":
        return LL, Hc[:, :3] + Hc[:, 3:6] + Hc[:, 6:9]
    elif cs == "mean":
        return LL, (Hc[:, :3] + Hc[:, 3:6] + Hc[:, 6:9]) / 3
    elif cs == "cat":
        return LL, Hc


if __name__ == "__main__":
    ok = True

    # Small shape (Wh < 128, single H tile).
    x_small = jax.random.normal(jax.random.PRNGKey(0), (2, 3, 16, 16),
                                dtype=jnp.float32)
    # Shape exercising the multi-tile H grid, a ragged final tile and a
    # lane-dense (Wh = 128) output.
    x_multi = jax.random.normal(jax.random.PRNGKey(1), (1, 3, 48, 256),
                                dtype=jnp.float32)

    for x, th in ((x_small, None), (x_multi, 16)):
        for cs in ("sum", "mean", "cat"):
            for norm in (True, False):
                fn = jax.jit(functools.partial(dwt_hc, cs=cs, norm=norm,
                                               tile_h=th))
                ll, hc = fn(x)
                jax.block_until_ready((ll, hc))
                ll_ref, hc_ref = _ref_dwt_hc(x, cs=cs, norm=norm)
                ok &= bool(jnp.allclose(ll, ll_ref, atol=1e-5, rtol=1e-5))
                ok &= bool(jnp.allclose(hc, hc_ref, atol=1e-5, rtol=1e-5))

    print("KERNEL_OK" if ok else "MISMATCH")
</pallas_src>

<mosaic_0001>
module attributes {stable_mosaic.version = 11 : i64} {
  func.func @_dwt_hc_kernel_reduce(%arg0: i32, %arg1: i32, %arg2: memref<1x3x8x8xf32, #tpu.memory_space<vmem>>, %arg3: memref<1x3x8x8xf32, #tpu.memory_space<vmem>>, %arg4: memref<1x3x8x8xf32, #tpu.memory_space<vmem>>, %arg5: memref<1x3x8x8xf32, #tpu.memory_space<vmem>>, %arg6: memref<1x3x8x8xf32, #tpu.memory_space<vmem>>, %arg7: memref<1x3x8x8xf32, #tpu.memory_space<vmem>>) attributes {dimension_semantics = [#tpu.dimension_semantics<parallel>, #tpu.dimension_semantics<parallel>], iteration_bounds = array<i64: 2, 1>, scalar_prefetch = 0 : i64, scratch_operands = 0 : i64, tpu.core_type = #tpu.core_type<tc>, window_params = [{transform_indices = @transform_0, window_bounds = array<i64: 1, 3, 8, 8>}, {transform_indices = @transform_1, window_bounds = array<i64: 1, 3, 8, 8>}, {transform_indices = @transform_2, window_bounds = array<i64: 1, 3, 8, 8>}, {transform_indices = @transform_3, window_bounds = array<i64: 1, 3, 8, 8>}, {transform_indices = @transform_4, window_bounds = array<i64: 1, 3, 8, 8>}, {transform_indices = @transform_5, window_bounds = array<i64: 1, 3, 8, 8>}]} {
    %c0 = arith.constant 0 : index
    %c0_0 = arith.constant 0 : index
    %c0_1 = arith.constant 0 : index
    %c0_2 = arith.constant 0 : index
    %0 = vector.load %arg2[%c0, %c0_0, %c0_1, %c0_2] : memref<1x3x8x8xf32, #tpu.memory_space<vmem>>, vector<1x3x8x8xf32>
    %1 = vector.shape_cast %0 : vector<1x3x8x8xf32> to vector<3x8x8xf32>
    %c0_3 = arith.constant 0 : index
    %c0_4 = arith.constant 0 : index
    %c0_5 = arith.constant 0 : index
    %c0_6 = arith.constant 0 : index
    %2 = vector.load %arg3[%c0_3, %c0_4, %c0_5, %c0_6] : memref<1x3x8x8xf32, #tpu.memory_space<vmem>>, vector<1x3x8x8xf32>
    %3 = vector.shape_cast %2 : vector<1x3x8x8xf32> to vector<3x8x8xf32>
    %c0_7 = arith.constant 0 : index
    %c0_8 = arith.constant 0 : index
    %c0_9 = arith.constant 0 : index
    %c0_10 = arith.constant 0 : index
    %4 = vector.load %arg4[%c0_7, %c0_8, %c0_9, %c0_10] : memref<1x3x8x8xf32, #tpu.memory_space<vmem>>, vector<1x3x8x8xf32>
    %5 = vector.shape_cast %4 : vector<1x3x8x8xf32> to vector<3x8x8xf32>
    %c0_11 = arith.constant 0 : index
    %c0_12 = arith.constant 0 : index
    %c0_13 = arith.constant 0 : index
    %c0_14 = arith.constant 0 : index
    %6 = vector.load %arg5[%c0_11, %c0_12, %c0_13, %c0_14] : memref<1x3x8x8xf32, #tpu.memory_space<vmem>>, vector<1x3x8x8xf32>
    %7 = vector.shape_cast %6 : vector<1x3x8x8xf32> to vector<3x8x8xf32>
    %8 = arith.addf %1, %3 : vector<3x8x8xf32>
    %9 = arith.addf %8, %5 : vector<3x8x8xf32>
    %10 = arith.addf %9, %7 : vector<3x8x8xf32>
    %cst = arith.constant 4.000000e+00 : f32
    %11 = vector.broadcast %cst : f32 to vector<3x8x8xf32>
    %12 = arith.mulf %11, %7 : vector<3x8x8xf32>
    %13 = arith.subf %12, %10 : vector<3x8x8xf32>
    %cst_15 = arith.constant 2.500000e-01 : f32
    %14 = vector.broadcast %cst_15 : f32 to vector<3x8x8xf32>
    %15 = arith.mulf %13, %14 : vector<3x8x8xf32>
    %cst_16 = arith.constant 1.500000e+00 : f32
    %16 = vector.broadcast %cst_16 : f32 to vector<3x8x8xf32>
    %17 = arith.addf %15, %16 : vector<3x8x8xf32>
    %cst_17 = arith.constant 5.000000e-01 : f32
    %18 = vector.broadcast %cst_17 : f32 to vector<3x8x8xf32>
    %19 = arith.mulf %18, %10 : vector<3x8x8xf32>
    %c0_18 = arith.constant 0 : index
    %c0_19 = arith.constant 0 : index
    %c0_20 = arith.constant 0 : index
    %c0_21 = arith.constant 0 : index
    %20 = vector.load %arg6[%c0_18, %c0_19, %c0_20, %c0_21] : memref<1x3x8x8xf32, #tpu.memory_space<vmem>>, vector<1x3x8x8xf32>
    %21 = vector.shape_cast %20 : vector<1x3x8x8xf32> to vector<3x8x8xf32>
    %22 = vector.shape_cast %19 : vector<3x8x8xf32> to vector<1x3x8x8xf32>
    tpu.vector_store %arg6[%c0_18, %c0_19, %c0_20, %c0_21], %22 {strides = array<i32>} : memref<1x3x8x8xf32, #tpu.memory_space<vmem>>, vector<1x3x8x8xf32>,
    %c0_22 = arith.constant 0 : index
    %c0_23 = arith.constant 0 : index
    %c0_24 = arith.constant 0 : index
    %c0_25 = arith.constant 0 : index
    %23 = vector.load %arg7[%c0_22, %c0_23, %c0_24, %c0_25] : memref<1x3x8x8xf32, #tpu.memory_space<vmem>>, vector<1x3x8x8xf32>
    %24 = vector.shape_cast %23 : vector<1x3x8x8xf32> to vector<3x8x8xf32>
    %25 = vector.shape_cast %17 : vector<3x8x8xf32> to vector<1x3x8x8xf32>
    tpu.vector_store %arg7[%c0_22, %c0_23, %c0_24, %c0_25], %25 {strides = array<i32>} : memref<1x3x8x8xf32, #tpu.memory_space<vmem>>, vector<1x3x8x8xf32>,
    return
  }
  func.func @transform_0(%arg0: i32, %arg1: i32) -> (i32, i32, i32, i32) {
    %c0_i32 = arith.constant 0 : i32
    %c0_i32_0 = arith.constant 0 : i32
    %c0_i32_1 = arith.constant 0 : i32
    return %arg0, %c0_i32, %arg1, %c0_i32_0 : i32, i32, i32, i32
  }
  func.func @transform_1(%arg0: i32, %arg1: i32) -> (i32, i32, i32, i32) {
    %c0_i32 = arith.constant 0 : i32
    %c0_i32_0 = arith.constant 0 : i32
    %c0_i32_1 = arith.constant 0 : i32
    return %arg0, %c0_i32, %arg1, %c0_i32_0 : i32, i32, i32, i32
  }
  func.func @transform_2(%arg0: i32, %arg1: i32) -> (i32, i32, i32, i32) {
    %c0_i32 = arith.constant 0 : i32
    %c0_i32_0 = arith.constant 0 : i32
    %c0_i32_1 = arith.constant 0 : i32
    return %arg0, %c0_i32, %arg1, %c0_i32_0 : i32, i32, i32, i32
  }
  func.func @transform_3(%arg0: i32, %arg1: i32) -> (i32, i32, i32, i32) {
    %c0_i32 = arith.constant 0 : i32
    %c0_i32_0 = arith.constant 0 : i32
    %c0_i32_1 = arith.constant 0 : i32
    return %arg0, %c0_i32, %arg1, %c0_i32_0 : i32, i32, i32, i32
  }
  func.func @transform_4(%arg0: i32, %arg1: i32) -> (i32, i32, i32, i32) {
    %c0_i32 = arith.constant 0 : i32
    %c0_i32_0 = arith.constant 0 : i32
    %c0_i32_1 = arith.constant 0 : i32
    return %arg0, %c0_i32, %arg1, %c0_i32_0 : i32, i32, i32, i32
  }
  func.func @transform_5(%arg0: i32, %arg1: i32) -> (i32, i32, i32, i32) {
    %c0_i32 = arith.constant 0 : i32
    %c0_i32_0 = arith.constant 0 : i32
    %c0_i32_1 = arith.constant 0 : i32
    return %arg0, %c0_i32, %arg1, %c0_i32_0 : i32, i32, i32, i32
  }
}

</mosaic_0001>

<bundles_post_ra>
// kernel: dwt_hc.1
= control target key start
LH: loop header
LB: loop body
LE: loop exit
PB: predicated region body
PF: predicated region fallthrough
CT: control target
= control target key end

     0   :  { %11 = vsyncpa [#allocation3], 0  ;;  %s1011_s0 = inlined_call_operand.vmem [shape: f32[2,3,8,8], index: 0, kind: input, shape index: {}]   ;;  %s1012_s1 = inlined_call_operand.vmem [shape: f32[2,3,8,8], index: 1, kind: input, shape index: {}]   ;;  %s1013_s2 = inlined_call_operand.vmem [shape: f32[2,3,8,8], index: 2, kind: input, shape index: {}]   ;;  %s1014_s3 = inlined_call_operand.vmem [shape: f32[2,3,8,8], index: 3, kind: input, shape index: {}]   ;;  %s1015_s4 = inlined_call_operand.hbm [shape: f32[2,3,8,8], index: 4, kind: output, shape index: {0}]   ;;  %s1016_s5 = inlined_call_operand.hbm [shape: f32[2,3,8,8], index: 5, kind: output, shape index: {1}]  }
   0x1   :  { %13 = vsyncpa [#allocation3 + $0x1], 0 }
   0x2   :  { %14 = vsyncpa [#allocation5], 0 }
   0x3   :  { %16 = vsyncpa [#allocation5 + $0x1], 0  ;;  %s825_s18 = smov 0   ;;  %s827_s19 = smov 0  }
   0x4   :  { %s829_s20 = smov 0   ;;  %s831_s21 = smov 0  }
   0x5   :  { %s833_s22 = smov 0   ;;  %s835_s23 = smov 0  }
   0x6 LB: > { %s600_s24 = sadd.s32 4294967295, %s789_s23   ;;  %s601_s25 = sadd.s32 4294967294, %s789_s23   ;;  %s789_s23 = sphi %s835_s23, %s22_s23   ;;  %s785_s22 = sphi %s833_s22, %s1026_s22   ;;  %s781_s21 = sphi %s831_s21, %s1025_s21   ;;  %s777_s20 = sphi %s829_s20, %s1024_s20   ;;  %s773_s19 = sphi %s827_s19, %s1023_s19   ;;  %s769_s18 = sphi %s825_s18, %s1022_s18  }
   0x7   : > { %s34_s26 = sadd.s32 1, %s785_s22  ;;  %s155_s27 = sadd.s32 1, %s777_s20 }
   0x8   : > { %p36_p0 = scmp.ge.s32.totalorder %s34_s26, 2  ;;  %p165_p1 = scmp.ne.s32.totalorder %s777_s20, %s773_s19 }
   0x9   : > { %p166_p2 = scmp.eq.s32.totalorder %s600_s24, 1  ;;  %p171_p3 = scmp.ne.s32.totalorder %s773_s19, %s769_s18 }
   0xa   : > { %s1028_s26 = smov (%p36_p0, %s34_s26), 0  ;;  %p172_p5 = scmp.eq.s32.totalorder %s601_s25, 1 }
   0xb   : > { %1018 = sst [smem:[#allocation8_spill]] %s1028_s26  ;;  %p865_p4 = por %p166_p2, %p165_p1 }
   0xc   : > { %s150_s29 = ssub.s32 %s785_s22, %s1028_s26  ;;  %p604_p6 = scmp.ge.s32.totalorder %s789_s23, 1 }
   0xd   : > { %p153_p7 = scmp.eq.s32.totalorder %s150_s29, 0  ;;  %p872_p8 = por %p172_p5, %p171_p3 }
   0xe   : > { %p262_p9 = scmp.lt.s32.totalorder %s789_s23, 3 }
   0xf   : > { %s878_s6 = scalar_select %p153_p7, %s777_s20, %s155_s27  }
  0x10   : > { %p263_p10 = pnand %p604_p6, %p262_p9 }
  0x11   : > { %p322_p11 = scmp.lt.s32.totalorder (!%p263_p10), %s781_s21, 1  ;;  %s882_s7 = sand.u32 (!%p263_p10), 1, %s773_s19   ;;  %vm390_vm0 = vcmask (!%p263_p10), 64512  }
  0x12   : > { %266 = sbr.rel (%p263_p10) target bundleno = 82 (0x52), region = 36  ;;  %s791_s24 = smov (!%p263_p10), [#allocation2]  }
  0x13   : > { %s613_s10 = smul.u32 (!%p263_p10), 24, %s882_s7 }
  0x14   : > { %s615_s11 = smul.u32 (!%p263_p10), 384, %s781_s21 }
  0x15   : > { %s914_s14 = scalar_lea.vmem (!%p263_p10), [#allocation4], %s613_s10 }
  0x16   : > { %s434_s15 = sshll.u32 (!%p263_p10), %s914_s14, 4  ;;  %s949_s15 = int_to_ptr.vmem [resolvable:$true] %s434_s15 }
  0x19   : > { %s323_s8 = scalar_select %p322_p11, %s781_s21, 1 }
  0x1b   : > { %s614_s9 = smul.u32 24, %s323_s8  ;;  %s314_s8 = scalar_lea.vmem [#allocation2], %s613_s10 }
  0x1d   : > { %s329_s13 = scalar_lea.vmem %s1011_s0, %s614_s9  ;;  %s337_s16 = scalar_lea.vmem %s1012_s1, %s614_s9 }
  0x1e   : > { %s345_s25 = scalar_lea.vmem %s1013_s2, %s614_s9  ;;  %s353_s26 = scalar_lea.vmem %s1014_s3, %s614_s9  ;;  %v354_v0 = vld [vmem:[%s329_s13] sm:$0xff]  ;;  %v355_v2 = vld [vmem:[%s329_s13 + $0x8] sm:$0xff]  ;;  %v356_v10 = vld [vmem:[%s329_s13 + $0x10] sm:$0xff] }
  0x1f   : > { %v357_v1 = vld [vmem:[%s337_s16] sm:$0xff]  ;;  %v358_v6 = vld [vmem:[%s337_s16 + $0x8] sm:$0xff]  ;;  %v359_v12 = vld [vmem:[%s337_s16 + $0x10] sm:$0xff]  ;;  %s417_s9 = sshll.u32 %s314_s8, 4  ;;  %s910_s13 = scalar_lea.hbm %s1015_s4, %s615_s11  ;;  %s902_s9 = int_to_ptr.vmem [resolvable:$true] %s417_s9 }
  0x20   : > { %v360_v3 = vld [vmem:[%s345_s25] sm:$0xff]  ;;  %v366_v5 = vadd.f32 %v357_v1, %v354_v0  ;;  %v361_v7 = vld [vmem:[%s345_s25 + $0x8] sm:$0xff]  ;;  %v367_v9 = vadd.f32 %v358_v6, %v355_v2  ;;  %v362_v13 = vld [vmem:[%s345_s25 + $0x10] sm:$0xff]  ;;  %v368_v17 = vadd.f32 %v359_v12, %v356_v10  ;;  %s398_s16 = scalar_lea.sflag [#allocation3], %s882_s7  ;;  %s679_s17 = scalar_lea.vmem %s902_s9, 384 }
  0x21   : > { %v363_v4 = vld [vmem:[%s353_s26] sm:$0xff]  ;;  %v364_v8 = vld [vmem:[%s353_s26 + $0x8] sm:$0xff]  ;;  %v365_v14 = vld [vmem:[%s353_s26 + $0x10] sm:$0xff]  ;;  %p680_p12 = scmp.ne.s32.totalorder %s902_s9, %s679_s17  ;;  %s683_s25 = sshll.u32 %s791_s24, 4  ;;  %s684_s25 = int_to_ptr.vmem [resolvable:$false] %s683_s25 }
  0x22   : > { %v369_v11 = vadd.f32 %v366_v5, %v360_v3  ;;  %v375_v15 = vmul.f32 4.0, %v363_v4  ;;  %v370_v16 = vadd.f32 %v367_v9, %v361_v7  ;;  %v376_v18 = vmul.f32 4.0, %v364_v8  ;;  %s685_s10 = scalar_lea.vmem %s684_s25, 768  ;;  %p686_p1 = scmp.lt.s32.totalorder %s902_s9, %s684_s25 }
  0x23   : > { %v371_v21 = vadd.f32 %v368_v17, %v362_v13  ;;  %v377_v22 = vmul.f32 4.0, %v365_v14  ;;  %p681_p13 = pnand %p680_p12, %p865_p4  ;;  %p687_p2 = scmp.lt.s32.totalorder %s685_s10, %s679_s17 }
  0x24   : > { %v372_v19 = vadd.f32 %v369_v11, %v363_v4  ;;  %v373_v20 = vadd.f32 %v370_v16, %v364_v8 }
  0x25   : > { %v374_v26 = vadd.f32 %v371_v21, %v365_v14  ;;  %p682_p0 = pneg %p681_p13  ;;  %p688_p3 = por %p687_p2, %p686_p1 }
  0x26   : > { %v387_v23 = vmul.f32 0.5, %v372_v19  ;;  %v378_v24 = vsub.f32 %v375_v15, %v372_v19  ;;  %v388_v25 = vmul.f32 0.5, %v373_v20  ;;  %v379_v27 = vsub.f32 %v376_v18, %v373_v20 }
  0x27   : > { %v389_v29 = vmul.f32 0.5, %v374_v26  ;;  %v380_v31 = vsub.f32 %v377_v22, %v374_v26  ;;  %p689_p5 = pnand %p688_p3, %p682_p0 }
  0x28   : > { %391 = vst.msk [vmem:[%s314_s8] sm:$0xff] %vm390_vm0, %v387_v23  ;;  %v381_v28 = vmul.f32 0.25, %v378_v24  ;;  %392 = vst.msk [vmem:[%s314_s8 + $0x8] sm:$0xff] %vm390_vm0, %v388_v25  ;;  %v382_v30 = vmul.f32 0.25, %v379_v27 }
  0x29   : > { %393 = vst.msk [vmem:[%s314_s8 + $0x10] sm:$0xff] %vm390_vm0, %v389_v29  ;;  %v383_v34 = vmul.f32 0.25, %v380_v31 }
  0x2a   : > { %v384_v32 = vadd.f32 1.5, %v381_v28  ;;  %v385_v33 = vadd.f32 1.5, %v382_v30 }
  0x2c   : > { %394 = vst.msk [vmem:[%s914_s14] sm:$0xff] %vm390_vm0, %v384_v32 }
  0x2d   : > { %692 = shalt.err (!%p689_p5)
}
  0x2e   : > { %s693_s27 = scalar_lea.hbm %s910_s13, 384  ;;  %s697_s26 = scalar_lea.hbm %s1015_s4, 768 }
  0x2f   : > { %p694_p6 = scmp.ne.s32.totalorder %s910_s13, %s693_s27  ;;  %p698_p10 = scmp.lt.u32.totalorder %s910_s13, %s1015_s4 }
  0x30   : > { %p699_p11 = scmp.lt.u32.totalorder %s697_s26, %s693_s27  ;;  %p701_p13 = scmp.lt.u32.totalorder %s693_s27, %s910_s13 }
  0x31   : > { %p695_p7 = pnand %p694_p6, %p865_p4 }
  0x32   : > { %p700_p12 = por %p699_p11, %p698_p10 }
  0x33   : > { %p696_p9 = pneg %p695_p7 }
  0x34   : > { %p702_p0 = por %p701_p13, %p700_p12 }
  0x36   : > { %p703_p1 = pnand %p702_p0, %p696_p9 }
  0x38   : > { %706 = shalt.err (!%p703_p1)
}
  0x39   : > { %s792_s17 = smov 128   ;;  %s793_s25 = smov 8   ;;  %395 = vst.msk [vmem:[%s914_s14 + $0x8] sm:$0xff] %vm390_vm0, %v385_v33  ;;  %v386_v35 = vadd.f32 1.5, %v383_v34 }
  0x3a   : > { %617 = dma.vmem_to_hbm [thread:$0]  (%p865_p4), %s902_s9, 384, %s910_s13, %s398_s16, %s792_s17, %s792_s17, %s793_s25  }
  0x3b   : > { %s958_s29 = scalar_lea.hbm %s1016_s5, %s615_s11  ;;  %396 = vst.msk [vmem:[%s914_s14 + $0x10] sm:$0xff] %vm390_vm0, %v386_v35  ;;  %s403_s8 = scalar_lea.sflag [#allocation5], %s882_s7 }
  0x3c   : > { %s707_s26 = scalar_lea.vmem %s949_s15, 384  ;;  %s794_s9 = smov [#allocation4]  }
  0x3d   : > { %p708_p2 = scmp.ne.s32.totalorder %s949_s15, %s707_s26  ;;  %s711_s13 = sshll.u32 %s794_s9, 4  ;;  %s712_s13 = int_to_ptr.vmem [resolvable:$false] %s711_s13 }
  0x3e   : > { %s713_s16 = scalar_lea.vmem %s712_s13, 768  ;;  %p714_p6 = scmp.lt.s32.totalorder %s949_s15, %s712_s13 }
  0x3f   : > { %p709_p3 = pnand %p708_p2, %p865_p4  ;;  %p715_p7 = scmp.lt.s32.totalorder %s713_s16, %s707_s26 }
  0x41   : > { %p710_p5 = pneg %p709_p3  ;;  %p716_p9 = por %p715_p7, %p714_p6 }
  0x43   : > { %p717_p10 = pnand %p716_p9, %p710_p5 }
  0x45   : > { %720 = shalt.err (!%p717_p10)
}
  0x46   : > { %s721_s21 = scalar_lea.hbm %s958_s29, 384  ;;  %s725_s12 = scalar_lea.hbm %s1016_s5, 768 }
  0x47   : > { %p722_p11 = scmp.ne.s32.totalorder %s958_s29, %s721_s21  ;;  %p726_p0 = scmp.lt.u32.totalorder %s958_s29, %s1016_s5 }
  0x48   : > { %p727_p1 = scmp.lt.u32.totalorder %s725_s12, %s721_s21  ;;  %p729_p3 = scmp.lt.u32.totalorder %s721_s21, %s958_s29 }
  0x49   : > { %p723_p12 = pnand %p722_p11, %p865_p4 }
  0x4a   : > { %p728_p2 = por %p727_p1, %p726_p0 }
  0x4b   : > { %p724_p13 = pneg %p723_p12 }
  0x4c   : > { %p730_p5 = por %p729_p3, %p728_p2 }
  0x4e   : > { %p731_p6 = pnand %p730_p5, %p724_p13 }
  0x50   : > { %734 = shalt.err (!%p731_p6)
}
  0x51   : > { %618 = dma.vmem_to_hbm [thread:$0]  (%p865_p4), %s949_s15, 384, %s958_s29, %s403_s8, %s792_s17, %s792_s17, %s793_s25  }
  0x52 PF: > { %p628_p7 = scmp.ge.s32.totalorder %s789_s23, 2  ;;  %s449_s27 = sand.u32 1, %s769_s18  }
  0x53   : > { %s450_s26 = scalar_lea.sflag [#allocation3], %s449_s27 }
  0x54   : > { %p622_p9 = pnand %p628_p7, %p872_p8 }
  0x56   : > { %760 = dma.done.wait (!%p622_p9), %s450_s26, 384  }
  0x57   : > { %762 = vsyncadd (!%p622_p9), %s450_s26, 4294966912  ;;  %s459_s28 = scalar_lea.sflag [#allocation5], %s449_s27 }
  0x58   : > { %764 = dma.done.wait (!%p622_p9), %s459_s28, 384  }
  0x59   : > { %766 = vsyncadd (!%p622_p9), %s459_s28, 4294966912  ;;  %s22_s23 = sadd.s32 1, %s789_s23   ;;  %s1021_s7 = sld [smem:[#allocation8_spill]] }
  0x5a   : > { %p19_p10 = scmp.ge.s32.totalorder %s22_s23, 4   ;;  %s1022_s18 = smov %s773_s19 }
  0x5b   : > { %s1023_s19 = smov %s777_s20  ;;  %s1024_s20 = smov %s878_s6 }
  0x5c   : > { %s1025_s21 = smov %s785_s22  ;;  %21 = sbr.rel (!%p19_p10) target bundleno = 6 (0x6), region = 97 }
  0x5f   : > { %s1026_s22 = smov %s1021_s7 }
  0x63   :  { %464 = vsyncpa [#allocation3], 1 }
  0x64   :  { %466 = vsyncpa [#allocation3 + $0x1], 1 }
  0x65   :  { %467 = vsyncpa [#allocation5], 1 }
  0x66   :  { %469 = vsyncpa [#allocation5 + $0x1], 1 }

</bundles_post_ra>
